<compile_context>
chip_gen: v6e
topology: v6e:2x2x1
jax: 0.10.0
libtpu: 0.0.40
codegen_flags: <defaults>
</compile_context>

<pallas_src>
import jax
import jax.numpy as jnp
from jax.experimental import pallas as pl
from jax.experimental.pallas import tpu as pltpu


def _round_up(x, m):
    return ((x + m - 1) // m) * m


# ---------------------------------------------------------------------------
# Kernel: one MXU matmul (f32 accumulation) + fused bias / ReLU epilogue (VPU).
# ---------------------------------------------------------------------------
def _fused_linear_relu_kernel(x_ref, w_ref, b_ref, out_ref):
    acc = jnp.dot(x_ref[...], w_ref[...], preferred_element_type=jnp.float32)
    out_ref[...] = jnp.maximum(acc + b_ref[...], 0.0).astype(out_ref.dtype)


# ---------------------------------------------------------------------------
# One-time parameter fusion (hoist out of the per-call path; reuse across steps).
# ---------------------------------------------------------------------------
def fuse_params(w0, b0, w1, b1, wc):
    """w0/w1: (N, F//2); b0/b1/wc: (N,) -> (F, n_pad) weight, (1, n_pad) bias."""
    n_cells = w0.shape[0]
    wc_row = wc.reshape(1, n_cells).astype(jnp.float32)
    w_fused = jnp.concatenate(
        [w1.T.astype(jnp.float32) * (1.0 - wc_row),   # rows hit by inputs[:, :F//2]
         w0.T.astype(jnp.float32) * wc_row],          # rows hit by inputs[:, F//2:]
        axis=0)                                        # (F, N)
    b_fused = (wc * b0 + (1.0 - wc) * b1).astype(jnp.float32).reshape(1, n_cells)

    # Lane-dense output: pad N once to a multiple of 128 (unmasked stores).
    n_pad = _round_up(n_cells, 128)
    if n_pad != n_cells:
        w_fused = jnp.pad(w_fused, ((0, 0), (0, n_pad - n_cells)))
        b_fused = jnp.pad(b_fused, ((0, 0), (0, n_pad - n_cells)))
    return w_fused, b_fused


def _plan_batch_tile(batch, feat, n_pad, b_tile_max, vmem_budget_bytes):
    b_pad8 = _round_up(max(batch, 1), 8)
    n_btiles = pl.cdiv(b_pad8, b_tile_max)
    # Keep >=2 batch blocks when the batch is large so both v7x TCs get work.
    if n_btiles < 2 and b_pad8 >= 512:
        n_btiles = 2
    b_tile = _round_up(pl.cdiv(b_pad8, n_btiles), 8)

    def vmem_bytes(bt):
        # double-buffered x and out blocks + resident weight/bias blocks (f32)
        return 4 * (2 * bt * feat + 2 * feat * n_pad + 2 * n_pad + 2 * bt * n_pad)

    # Stay well inside v5e's 16 MiB scoped-VMEM default (tightest constraint).
    while b_tile > 8 and vmem_bytes(b_tile) > vmem_budget_bytes:
        b_tile = _round_up(b_tile // 2, 8)
    return b_tile


def complexvis_forward(inputs, w_fused, b_fused, n_cells,
                       *, b_tile_max=2048, vmem_budget_bytes=12 << 20):
    """inputs: (B, F) f32; w_fused: (F, n_pad); b_fused: (1, n_pad) (from fuse_params)."""
    B, F = inputs.shape
    assert w_fused.shape[0] == F and b_fused.shape == (1, w_fused.shape[1])
    n_pad = w_fused.shape[1]

    b_tile = _plan_batch_tile(B, F, n_pad, b_tile_max, vmem_budget_bytes)
    grid = (pl.cdiv(B, b_tile),)   # 1-D batch grid; weight/bias stay resident

    out = pl.pallas_call(
        _fused_linear_relu_kernel,
        out_shape=jax.ShapeDtypeStruct((B, n_pad), jnp.float32),
        grid=grid,
        in_specs=[
            # activations: streamed over batch, full K (= F) per block
            pl.BlockSpec((b_tile, F), lambda i: (i, 0)),
            # fused weight: constant index_map -> fetched once, VMEM-resident
            pl.BlockSpec((F, n_pad), lambda i: (0, 0)),
            # fused bias: constant index_map -> fetched once, VMEM-resident
            pl.BlockSpec((1, n_pad), lambda i: (0, 0)),
        ],
        out_specs=pl.BlockSpec((b_tile, n_pad), lambda i: (i, 0)),
        compiler_params=pltpu.CompilerParams(
            dimension_semantics=("parallel",)),
    )(inputs.astype(jnp.float32), w_fused, b_fused)

    # Slice only the dimension that was actually padded (batch never is).
    if n_pad != n_cells:
        out = out[:, :n_cells]
    return out


# ---------------------------------------------------------------------------
# Parameter init matching the PyTorch module + pure-JAX reference.
# ---------------------------------------------------------------------------
def init_params(key, in_features, n_cells):
    half = in_features // 2
    k0, k1, kb0, kb1 = jax.random.split(key, 4)
    # torch.nn.init.uniform_(weight, a=-1e-6, b=1e-6)
    w0 = jax.random.uniform(k0, (n_cells, half), jnp.float32, -1e-6, 1e-6)
    w1 = jax.random.uniform(k1, (n_cells, half), jnp.float32, -1e-6, 1e-6)
    # nn.Linear default bias init: U(-1/sqrt(fan_in), 1/sqrt(fan_in))
    bound = 1.0 / (half ** 0.5)
    b0 = jax.random.uniform(kb0, (n_cells,), jnp.float32, -bound, bound)
    b1 = jax.random.uniform(kb1, (n_cells,), jnp.float32, -bound, bound)
    # self.Wc = torch.ones(N_cells)
    wc = jnp.ones((n_cells,), jnp.float32)
    return w0, b0, w1, b1, wc


def reference_forward(inputs, w0, b0, w1, b1, wc):
    half = inputs.shape[1] // 2
    out0 = inputs[:, half:] @ w0.T + b0
    out1 = inputs[:, :half] @ w1.T + b1
    return jnp.maximum(wc * out0 + (1.0 - wc) * out1, 0.0)


if __name__ == "__main__":
    key = jax.random.PRNGKey(0)

    def run_case(B, F, N, case_key, random_wc=False, b_tile_max=2048):
        kx, kp, kw = jax.random.split(case_key, 3)
        x = jax.random.normal(kx, (B, F), jnp.float32)
        w0, b0, w1, b1, wc = init_params(kp, F, N)
        if random_wc:  # non-trivial mix so both branches are exercised
            wc = jax.random.uniform(kw, (N,), jnp.float32, 0.0, 1.0)
        w_fused, b_fused = fuse_params(w0, b0, w1, b1, wc)  # one-time fusion
        out = jax.block_until_ready(
            complexvis_forward(x, w_fused, b_fused, N, b_tile_max=b_tile_max))
        ref = reference_forward(x, w0, b0, w1, b1, wc)
        assert out.shape == (B, N)
        assert jnp.allclose(out, ref, atol=1e-5, rtol=1e-5)

    k1, k2, k3 = jax.random.split(key, 3)
    # Test 1: shapes consistent with the module: batch=2, in_features=32, N_cells=8.
    run_case(2, 32, 8, k1)
    # Test 2: N padded to 256 lanes + non-trivial Wc mix.
    run_case(64, 32, 130, k2, random_wc=True)
    # Test 3: multiple batch tiles with a ragged last block (forced small tile).
    run_case(300, 32, 8, k3, random_wc=True, b_tile_max=128)

    # TODO(synk): shifter network / Affine warp path (train_shifter=True), the
    # per-cell `celln` path, and posNN mixing (move_input) are not part of the
    # default forward and are left unimplemented.
    print("KERNEL_OK")
</pallas_src>

<mosaic_0001>
module attributes {stable_mosaic.version = 11 : i64} {
  func.func @_fused_linear_relu_kernel(%arg0: i32, %arg1: memref<8x32xf32, #tpu.memory_space<vmem>>, %arg2: memref<32x128xf32, #tpu.memory_space<vmem>>, %arg3: memref<1x128xf32, #tpu.memory_space<vmem>>, %arg4: memref<8x128xf32, #tpu.memory_space<vmem>>) attributes {dimension_semantics = [#tpu.dimension_semantics<parallel>], iteration_bounds = array<i64: 1>, scalar_prefetch = 0 : i64, scratch_operands = 0 : i64, tpu.core_type = #tpu.core_type<tc>, window_params = [{transform_indices = @transform_0, window_bounds = array<i64: 8, 32>}, {pipeline_mode = #tpu.pipeline_mode<synchronous>, transform_indices = @transform_1, window_bounds = array<i64: 32, 128>}, {pipeline_mode = #tpu.pipeline_mode<synchronous>, transform_indices = @transform_2, window_bounds = array<i64: 1, 128>}, {transform_indices = @transform_3, window_bounds = array<i64: 8, 128>}]} {
    %c0 = arith.constant 0 : index
    %c0_0 = arith.constant 0 : index
    %0 = vector.load %arg1[%c0, %c0_0] : memref<8x32xf32, #tpu.memory_space<vmem>>, vector<8x32xf32>
    %c0_1 = arith.constant 0 : index
    %c0_2 = arith.constant 0 : index
    %1 = vector.load %arg2[%c0_1, %c0_2] : memref<32x128xf32, #tpu.memory_space<vmem>>, vector<32x128xf32>
    %cst = arith.constant dense<0.000000e+00> : vector<8x128xf32>
    %2 = tpu.matmul %0, %1, %cst {dimension_numbers = #tpu.dot_dimension_numbers<[1], [0], [0], [1], [0, 0, 1, 1], [], []>} : vector<8x32xf32>, vector<32x128xf32>, vector<8x128xf32> -> vector<8x128xf32>
    %c0_3 = arith.constant 0 : index
    %c0_4 = arith.constant 0 : index
    %3 = vector.load %arg3[%c0_3, %c0_4] : memref<1x128xf32, #tpu.memory_space<vmem>>, vector<1x128xf32>
    %4 = vector.broadcast %3 : vector<1x128xf32> to vector<8x128xf32>
    %5 = arith.addf %2, %4 : vector<8x128xf32>
    %cst_5 = arith.constant 0.000000e+00 : f32
    %6 = vector.broadcast %cst_5 : f32 to vector<8x128xf32>
    %7 = arith.maximumf %5, %6 : vector<8x128xf32>
    %c0_6 = arith.constant 0 : index
    %c0_7 = arith.constant 0 : index
    %8 = vector.load %arg4[%c0_6, %c0_7] : memref<8x128xf32, #tpu.memory_space<vmem>>, vector<8x128xf32>
    tpu.vector_store %arg4[%c0_6, %c0_7], %7 {strides = array<i32>} : memref<8x128xf32, #tpu.memory_space<vmem>>, vector<8x128xf32>,
    return
  }
  func.func @transform_0(%arg0: i32) -> (i32, i32) {
    %c0_i32 = arith.constant 0 : i32
    %c0_i32_0 = arith.constant 0 : i32
    return %arg0, %c0_i32 : i32, i32
  }
  func.func @transform_1(%arg0: i32) -> (i32, i32) {
    %c0_i32 = arith.constant 0 : i32
    %c0_i32_0 = arith.constant 0 : i32
    %c0_i32_1 = arith.constant 0 : i32
    return %c0_i32, %c0_i32_0 : i32, i32
  }
  func.func @transform_2(%arg0: i32) -> (i32, i32) {
    %c0_i32 = arith.constant 0 : i32
    %c0_i32_0 = arith.constant 0 : i32
    %c0_i32_1 = arith.constant 0 : i32
    return %c0_i32, %c0_i32_0 : i32, i32
  }
  func.func @transform_3(%arg0: i32) -> (i32, i32) {
    %c0_i32 = arith.constant 0 : i32
    %c0_i32_0 = arith.constant 0 : i32
    return %arg0, %c0_i32 : i32, i32
  }
}

</mosaic_0001>

<bundles_post_ra>
// kernel: tpu_custom_call.1
= control target key start
LH: loop header
LB: loop body
LE: loop exit
PB: predicated region body
PF: predicated region fallthrough
CT: control target
= control target key end

     0   :  { %8 = vsyncpa [#allocation3], 0  ;;  %s289_s0 = inlined_call_operand.hbm [shape: f32[2,32], index: 0, kind: input, shape index: {}]   ;;  %s290_s1 = inlined_call_operand.hbm [shape: f32[32,128], index: 1, kind: input, shape index: {}]   ;;  %s291_s2 = inlined_call_operand.vmem [shape: f32[1,128], index: 2, kind: input, shape index: {}]   ;;  %s292_s3 = inlined_call_operand.hbm [shape: f32[2,128], index: 3, kind: output, shape index: {}]  }
   0x1   :  { %9 = vsyncpa [#allocation6], 0 }
   0x2   :  { %10 = vsyncpa [#allocation4], 0 }
   0x3   :  { %15 = vsyncadd [#allocation3], 96  ;;  %s242_s12 = smov [#allocation2]  }
   0x4   :  { %s16_s13 = sshll.u32 %s242_s12, 4  ;;  %s17_s13 = int_to_ptr.vmem [resolvable:$true] %s16_s13 }
   0x5   :  { %s184_s14 = scalar_lea.vmem %s17_s13, 32  ;;  %s188_s15 = scalar_lea.vmem %s17_s13, 128 }
   0x6   :  { %p185_p0 = scmp.ne.s32.totalorder %s17_s13, %s184_s14  ;;  %p189_p1 = scmp.lt.s32.totalorder %s17_s13, %s17_s13 }
   0x7   :  { %p190_p2 = scmp.lt.s32.totalorder %s188_s15, %s184_s14 }
   0x9   :  { %p191_p3 = por %p190_p2, %p189_p1 }
   0xb   :  { %p192_p4 = pnand %p191_p3, %p185_p0 }
   0xd   :  { %195 = shalt.err (!%p192_p4)
}
   0xe   :  { %s243_s16 = smov 32   ;;  %s244_s17 = smov 2  }
   0xf   :  { %22 = dma.hbm_to_vmem [thread:$0]  %s289_s0, 32, %s17_s13, [#allocation3], %s243_s16, %s243_s16, %s244_s17  }
  0x10   :  { %s245_s20 = smov [#allocation5]  }
  0x11   :  { %s28_s21 = sshll.u32 %s245_s20, 4  ;;  %s29_s21 = int_to_ptr.vmem [resolvable:$true] %s28_s21 }
  0x12   :  { %s204_s22 = scalar_lea.vmem %s29_s21, 512  ;;  %p209_p6 = scmp.lt.s32.totalorder %s29_s21, %s29_s21 }
  0x13   :  { %p205_p5 = scmp.ne.s32.totalorder %s29_s21, %s204_s22  ;;  %p210_p7 = scmp.lt.s32.totalorder %s204_s22, %s204_s22 }
  0x15   :  { %p211_p8 = por %p210_p7, %p209_p6 }
  0x17   :  { %p212_p9 = pnand %p211_p8, %p205_p5 }
  0x19   :  { %215 = shalt.err (!%p212_p9)
}
  0x1a   :  { %s246_s23 = smov 128   ;;  %s247_s24 = smov 8  }
  0x1b   :  { %34 = dma.hbm_to_vmem [thread:$0]  %s290_s1, 512, %s29_s21, [#allocation6], %s246_s23, %s246_s23, %s247_s24  }
  0x1c   :  { %236 = dma.done.wait [#allocation3], 128  }
  0x1d   :  { %237 = vsyncadd [#allocation3], 4294967168 }
  0x1e   :  { %238 = dma.done.wait [#allocation6], 512  }
  0x1f   :  { %239 = vsyncadd [#allocation6], 4294966784  ;;  %v248_v0 = vmov 0.0   ;;  %vm249_vm0 = vmmov 0   ;;  %v47_v1 = vld [vmem:[#allocation5 + $0x18] sm:$0xff]  ;;  %v46_v2 = vld [vmem:[#allocation5 + $0x10] sm:$0xff] }
  0x20   :  { %156 = vmatprep.subr.mxu0 %v248_v0  ;;  %164 = vmatprep.mubr.msk.f32.mxu0 %vm249_vm0, %v248_v0  ;;  %v45_v3 = vld [vmem:[#allocation5 + $0x8] sm:$0xff]  ;;  %v44_v4 = vld [vmem:[#allocation5] sm:$0xff]  ;;  %v43_v5 = vld [vmem:[#allocation2] sm:$0xff]  ;;  %vm55_vm1 = vcmask 261120  }
  0x21   :  { %157 = vmatpush3.msra.mxu0 %v47_v1  ;;  %v149_v6 = vld [vmem:[%s291_s2] ss:$0 sm:$0xff] }
  0x22   :  { %158 = vmatprep.subr.mxu0 %v248_v0 }
  0x23   :  { %159 = vmatpush3.msra.mxu0 %v46_v2 }
  0x24   :  { %160 = vmatprep.subr.mxu0 %v248_v0 }
  0x25   :  { %161 = vmatpush3.msra.mxu0 %v45_v3 }
  0x26   :  { %162 = vmatprep.subr.mxu0 %v248_v0 }
  0x27   :  { %163 = vmatpush3.msra.mxu0 %v44_v4 }
  0x28   :  { %165 = vmatmul.mubr.msk.f32.vlgmr.msra.gmra.mxu0 %vm55_vm1, %v43_v5 }
  0xe8   :  { %v125_v7 = vpop.f32.mrf.mxu0 }
  0xe9   :  { %v126_v8 = vadd.f32 %v149_v6, %v125_v7 }
  0xea   :  { %v166_v9 = vpop.f32.mrf.mxu0 }
  0xeb   :  { %v129_v10 = vmax.f32 %v126_v8, 0.0 }
  0xed   :  { %130 = vst [vmem:[#allocation7] sm:$0xff] %v129_v10 }
  0xee   :  { %135 = vsyncadd [#allocation4], 96  ;;  %s250_s27 = smov [#allocation7]  }
  0xef   :  { %s136_s28 = sshll.u32 %s250_s27, 4  ;;  %s137_s28 = int_to_ptr.vmem [resolvable:$true] %s136_s28 }
  0xf0   :  { %s216_s29 = scalar_lea.vmem %s137_s28, 32  ;;  %s220_s30 = scalar_lea.vmem %s137_s28, 128 }
  0xf1   :  { %p217_p10 = scmp.ne.s32.totalorder %s137_s28, %s216_s29  ;;  %p221_p11 = scmp.lt.s32.totalorder %s137_s28, %s137_s28 }
  0xf2   :  { %p222_p12 = scmp.lt.s32.totalorder %s220_s30, %s216_s29 }
  0xf4   :  { %p223_p13 = por %p222_p12, %p221_p11 }
  0xf6   :  { %p224_p0 = pnand %p223_p13, %p217_p10 }
  0xf8   :  { %227 = shalt.err (!%p224_p0)
}
  0xf9   :  { %142 = dma.vmem_to_hbm [thread:$0]  %s137_s28, 32, %s292_s3, [#allocation4], %s243_s16, %s243_s16, %s244_s17  }
  0xfa   :  { %240 = dma.done.wait [#allocation4], 128  }
  0xfb   :  { %241 = vsyncadd [#allocation4], 4294967168 }
  0xfc   :  { %146 = vsyncpa [#allocation3], 1 }
  0xfd   :  { %147 = vsyncpa [#allocation6], 1 }
  0xfe   :  { %148 = vsyncpa [#allocation4], 1 }

</bundles_post_ra>
